<compile_context>
chip_gen: v6e
topology: v6e:2x2x1
jax: 0.10.0
libtpu: 0.0.40
codegen_flags: <defaults>
</compile_context>

<pallas_src>
import functools

import jax
import jax.numpy as jnp
from jax.experimental import pallas as pl
from jax.experimental.pallas import tpu as pltpu


def categorical_head_kernel(x_ref, w_ref, b_ref, o_ref, *, approx_recip=True):
    # x_ref: [TB, F], w_ref: [F, A], b_ref: [1, A], o_ref: [TB, A]
    logits = jnp.dot(x_ref[...], w_ref[...], preferred_element_type=jnp.float32)
    logits = logits + b_ref[...]                       # broadcast bias over batch
    # numerically-stable softmax along the last (action) axis, all in f32
    m = jnp.max(logits, axis=-1, keepdims=True)
    e = jnp.exp(logits - m)
    denom = jnp.sum(e, axis=-1, keepdims=True)
    if approx_recip:
        # EUP vrcp (otherwise-idle bundle slot); ~1e-3 rel error is harmless
        # for Categorical sampling. Use approx_recip=False for training paths
        # that take log(probs) / entropy of the result.
        inv = pl.reciprocal(denom, approx=True)
    else:
        inv = 1.0 / denom
    o_ref[...] = (e * inv).astype(o_ref.dtype)


def _sublane_multiple(itemsize):
    # f32 -> 8 rows/sublane group, bf16 -> 16, int8/fp8 -> 32
    return max(8, 32 // max(int(itemsize), 1))


def _pick_block_b(B, F, A, itemsize=4, *, vmem_budget_bytes=24 << 20,
                  target_x_bytes=2 << 20, num_cores=2):
    """Batch tile sized by bytes of the x stream.

    Targets ~`target_x_bytes` of x per pipeline buffer (HBM roofline needs
    ~1-2 MiB DMAs), clamped by a conservative VMEM budget that counts the
    weight/bias blocks double-buffered (pipeline default), and split so the
    grid has >= `num_cores` steps (v7x dual-TC sharding) when B allows.
    Rounded to the dtype's sublane multiple. No even-division requirement:
    one partial trailing block is accepted.
    """
    sub = _sublane_multiple(itemsize)
    if B <= sub:
        return int(B)                                   # full-dim block, no tiling

    fixed = 2 * (F * A * itemsize + A * 4)              # 2x-buffered weight + bias
    per_row = 2 * F * itemsize + 2 * A * 4              # 2x-buffered x tile + out tile
    avail = vmem_budget_bytes - fixed
    if avail < per_row * sub:
        # Weight blocks alone dominate the budget: minimal tile; the wrapper
        # raises vmem_limit_bytes to cover the real footprint.
        return int(min(B, sub))

    rows_budget = avail // per_row
    rows_target = max(sub, target_x_bytes // max(F * itemsize, 1))
    rows = min(rows_budget, rows_target, B)
    if B > sub * num_cores:
        # Guarantee >= num_cores roughly balanced grid steps.
        rows = min(rows, pl.cdiv(B, num_cores))
    rows = max(sub, (rows // sub) * sub)
    return int(min(rows, B))


def categorical_head_forward(x, w_t, b, *, block_b=None, approx_reciprocal=True):
    """x: [B, F], w_t: [F, A] (already transposed), b: [A].

    Returns action probabilities [B, A] float32
    (== Categorical(probs=...).probs).

    x / w_t may be f32 or bf16 (bf16 halves the dominant x HBM stream on
    v6e/v7x); the matmul accumulates in f32 and the softmax is f32.
    """
    B, F = x.shape
    F2, A = w_t.shape
    assert F == F2, f"feature dims mismatch: {F} vs {F2}"
    b2 = b.reshape(1, A).astype(jnp.float32)

    x_itemsize = jnp.dtype(x.dtype).itemsize
    w_itemsize = jnp.dtype(w_t.dtype).itemsize

    if block_b is None:
        block_b = _pick_block_b(B, F, A, itemsize=x_itemsize)
    block_b = int(min(block_b, B))
    grid_b = pl.cdiv(B, block_b)

    # Explicit VMEM limit: double-buffered x/out tiles + double-buffered
    # weight/bias blocks + headroom for internal scratch. Always set it so the
    # kernel is independent of per-chip scoped defaults (v5e: 16 MiB).
    footprint = (2 * block_b * F * x_itemsize          # x double buffer
                 + 2 * block_b * A * 4                 # out double buffer
                 + 2 * (F * A * w_itemsize + A * 4))   # weight + bias double buffer
    vmem_limit = int(min(max(footprint + (4 << 20), 16 << 20), 48 << 20))

    cost = pl.CostEstimate(
        flops=2 * B * F * A,
        transcendentals=B * A,                          # one exp per logit
        bytes_accessed=B * F * x_itemsize + F * A * w_itemsize + A * 4 + B * A * 4,
    )

    kernel = functools.partial(categorical_head_kernel,
                               approx_recip=approx_reciprocal)

    # TODO(synk): for tiny A (<<128) the [TB, A] store is a masked vst.msk; a
    # lane-dense repacked output slab is not worth the in-kernel relayout at
    # these output byte counts (output is ~A/F of the input stream).
    return pl.pallas_call(
        kernel,
        out_shape=jax.ShapeDtypeStruct((B, A), jnp.float32),
        grid=(grid_b,),
        in_specs=[
            # x: tiled over the batch grid (double-buffered by the pipeline)
            pl.BlockSpec((block_b, F), lambda i: (i, 0)),
            # weight / bias: constant index_map -> loaded once, VMEM-resident
            pl.BlockSpec((F, A), lambda i: (0, 0)),
            pl.BlockSpec((1, A), lambda i: (0, 0)),
        ],
        out_specs=pl.BlockSpec((block_b, A), lambda i: (i, 0)),
        compiler_params=pltpu.CompilerParams(
            dimension_semantics=("parallel",),   # batch rows are independent
            vmem_limit_bytes=vmem_limit,
        ),
        cost_estimate=cost,
    )(x, w_t, b2)


def ortho_init_linear(key, feature_dim, num_action, weight_scale=0.01,
                      constant_bias=0.0):
    """Deterministic orthogonal init matching lagom's ortho_init for nn.Linear.

    nn.Linear weight has shape [num_action, feature_dim]; we orthogonalize the
    gaussian draw via QR and scale by weight_scale. Bias is constant.
    """
    g = jax.random.normal(key, (num_action, feature_dim), dtype=jnp.float32)
    if num_action < feature_dim:
        q, r = jnp.linalg.qr(g.T)          # q: [feature_dim, num_action]
        q = q * jnp.sign(jnp.diag(r))      # fix sign ambiguity (deterministic)
        w = q.T                            # [num_action, feature_dim]
    else:
        q, r = jnp.linalg.qr(g)
        q = q * jnp.sign(jnp.diag(r))
        w = q
    w = weight_scale * w
    b = jnp.full((num_action,), constant_bias, dtype=jnp.float32)
    return w.astype(jnp.float32), b


def _reference(x, w, b):
    return jax.nn.softmax(x.astype(jnp.float32) @ w.T.astype(jnp.float32) + b,
                          axis=-1)


if __name__ == "__main__":
    key = jax.random.PRNGKey(0)
    k_x1, k_w1, k_x2, k_w2, k_x3, k_w3 = jax.random.split(key, 6)

    # approx=True reciprocal -> loosen tolerances vs exact softmax reference
    ATOL = 2e-3

    # --- Case 1: docstring-like shapes (CategoricalHead -> F=32, A=4) -------
    feature_dim, num_action, batch = 32, 4, 2
    x1 = jax.random.normal(k_x1, (batch, feature_dim), dtype=jnp.float32)
    w1, b1 = ortho_init_linear(k_w1, feature_dim, num_action,
                               weight_scale=0.01, constant_bias=0.0)
    probs1 = categorical_head_forward(x1, w1.T, b1)
    probs1 = jax.block_until_ready(probs1)
    ref1 = _reference(x1, w1, b1)
    assert probs1.shape == (batch, num_action)
    assert jnp.allclose(probs1, ref1, atol=ATOL, rtol=ATOL)
    assert jnp.allclose(jnp.sum(probs1, axis=-1), 1.0, atol=ATOL)

    # --- Case 2: explicit tile -> exercises a multi-step batch grid ---------
    batch2 = 64
    x2 = jax.random.normal(k_x2, (batch2, feature_dim), dtype=jnp.float32)
    w2, b2 = ortho_init_linear(k_w2, feature_dim, num_action,
                               weight_scale=0.01, constant_bias=0.0)
    probs2 = categorical_head_forward(x2, w2.T, b2, block_b=16)  # grid of 4
    probs2 = jax.block_until_ready(probs2)
    ref2 = _reference(x2, w2, b2)
    assert probs2.shape == (batch2, num_action)
    assert jnp.allclose(probs2, ref2, atol=ATOL, rtol=ATOL)
    assert jnp.allclose(jnp.sum(probs2, axis=-1), 1.0, atol=ATOL)

    # --- Case 3: auto tile with B not a multiple of the tile ----------------
    # (exercises the partial trailing block + >=2 grid steps policy)
    batch3 = 200
    x3 = jax.random.normal(k_x3, (batch3, feature_dim), dtype=jnp.float32)
    w3, b3 = ortho_init_linear(k_w3, feature_dim, num_action,
                               weight_scale=0.01, constant_bias=0.0)
    probs3 = categorical_head_forward(x3, w3.T, b3)
    probs3 = jax.block_until_ready(probs3)
    ref3 = _reference(x3, w3, b3)
    assert probs3.shape == (batch3, num_action)
    assert jnp.allclose(probs3, ref3, atol=ATOL, rtol=ATOL)
    assert jnp.allclose(jnp.sum(probs3, axis=-1), 1.0, atol=ATOL)

    # --- Case 4: bf16 x / w_t stream (halves dominant HBM traffic) ----------
    x4 = x2.astype(jnp.bfloat16)
    w4t = w2.T.astype(jnp.bfloat16)
    probs4 = categorical_head_forward(x4, w4t, b2)
    probs4 = jax.block_until_ready(probs4)
    ref4 = _reference(x4, w4t.T, b2)
    ATOL_BF16 = 2e-2
    assert probs4.shape == (batch2, num_action)
    assert jnp.allclose(probs4, ref4, atol=ATOL_BF16, rtol=ATOL_BF16)
    assert jnp.allclose(jnp.sum(probs4, axis=-1), 1.0, atol=ATOL_BF16)

    print("KERNEL_OK")
</pallas_src>

<mosaic_0001>
module attributes {stable_mosaic.version = 11 : i64} {
  func.func @categorical_head_kernel(%arg0: i32, %arg1: memref<2x32xf32, #tpu.memory_space<vmem>>, %arg2: memref<32x4xf32, #tpu.memory_space<vmem>>, %arg3: memref<1x4xf32, #tpu.memory_space<vmem>>, %arg4: memref<2x4xf32, #tpu.memory_space<vmem>>) attributes {dimension_semantics = [#tpu.dimension_semantics<parallel>], iteration_bounds = array<i64: 1>, scalar_prefetch = 0 : i64, scratch_operands = 0 : i64, tpu.core_type = #tpu.core_type<tc>, window_params = [{transform_indices = @transform_0, window_bounds = array<i64: 2, 32>}, {pipeline_mode = #tpu.pipeline_mode<synchronous>, transform_indices = @transform_1, window_bounds = array<i64: 32, 4>}, {pipeline_mode = #tpu.pipeline_mode<synchronous>, transform_indices = @transform_2, window_bounds = array<i64: 1, 4>}, {transform_indices = @transform_3, window_bounds = array<i64: 2, 4>}]} {
    %c0 = arith.constant 0 : index
    %c0_0 = arith.constant 0 : index
    %0 = vector.load %arg1[%c0, %c0_0] : memref<2x32xf32, #tpu.memory_space<vmem>>, vector<2x32xf32>
    %c0_1 = arith.constant 0 : index
    %c0_2 = arith.constant 0 : index
    %1 = vector.load %arg2[%c0_1, %c0_2] : memref<32x4xf32, #tpu.memory_space<vmem>>, vector<32x4xf32>
    %cst = arith.constant dense<0.000000e+00> : vector<2x4xf32>
    %2 = tpu.matmul %0, %1, %cst {dimension_numbers = #tpu.dot_dimension_numbers<[1], [0], [0], [1], [0, 0, 1, 1], [], []>} : vector<2x32xf32>, vector<32x4xf32>, vector<2x4xf32> -> vector<2x4xf32>
    %c0_3 = arith.constant 0 : index
    %c0_4 = arith.constant 0 : index
    %3 = vector.load %arg3[%c0_3, %c0_4] : memref<1x4xf32, #tpu.memory_space<vmem>>, vector<1x4xf32>
    %4 = vector.broadcast %3 : vector<1x4xf32> to vector<2x4xf32>
    %5 = arith.addf %2, %4 : vector<2x4xf32>
    %cst_5 = arith.constant dense<0xFF800000> : vector<2xf32>
    %6 = vector.multi_reduction <maximumf>, %5, %cst_5 [1] : vector<2x4xf32> to vector<2xf32>
    %7 = vector.shape_cast %6 : vector<2xf32> to vector<2x1xf32>
    %8 = vector.broadcast %7 : vector<2x1xf32> to vector<2x4xf32>
    %9 = arith.subf %5, %8 : vector<2x4xf32>
    %10 = math.exp %9 : vector<2x4xf32>
    %cst_6 = arith.constant dense<0.000000e+00> : vector<2xf32>
    %11 = vector.multi_reduction <add>, %10, %cst_6 [1] : vector<2x4xf32> to vector<2xf32>
    %12 = vector.shape_cast %11 : vector<2xf32> to vector<2x1xf32>
    %13 = tpu.reciprocal %12 {approx = true} : vector<2x1xf32> -> vector<2x1xf32>
    %14 = vector.broadcast %13 : vector<2x1xf32> to vector<2x4xf32>
    %15 = arith.mulf %10, %14 : vector<2x4xf32>
    %c0_7 = arith.constant 0 : index
    %c0_8 = arith.constant 0 : index
    %16 = vector.load %arg4[%c0_7, %c0_8] : memref<2x4xf32, #tpu.memory_space<vmem>>, vector<2x4xf32>
    tpu.vector_store %arg4[%c0_7, %c0_8], %15 {strides = array<i32>} : memref<2x4xf32, #tpu.memory_space<vmem>>, vector<2x4xf32>,
    return
  }
  func.func @transform_0(%arg0: i32) -> (i32, i32) {
    %c0_i32 = arith.constant 0 : i32
    %c0_i32_0 = arith.constant 0 : i32
    return %arg0, %c0_i32 : i32, i32
  }
  func.func @transform_1(%arg0: i32) -> (i32, i32) {
    %c0_i32 = arith.constant 0 : i32
    %c0_i32_0 = arith.constant 0 : i32
    %c0_i32_1 = arith.constant 0 : i32
    return %c0_i32, %c0_i32_0 : i32, i32
  }
  func.func @transform_2(%arg0: i32) -> (i32, i32) {
    %c0_i32 = arith.constant 0 : i32
    %c0_i32_0 = arith.constant 0 : i32
    %c0_i32_1 = arith.constant 0 : i32
    return %c0_i32, %c0_i32_0 : i32, i32
  }
  func.func @transform_3(%arg0: i32) -> (i32, i32) {
    %c0_i32 = arith.constant 0 : i32
    %c0_i32_0 = arith.constant 0 : i32
    return %arg0, %c0_i32 : i32, i32
  }
}

</mosaic_0001>

<bundles_post_ra>
// kernel: tpu_custom_call.1
= control target key start
LH: loop header
LB: loop body
LE: loop exit
PB: predicated region body
PF: predicated region fallthrough
CT: control target
= control target key end

     0   :  { %v175_v1 = vmov 0.0   ;;  %vm176_vm0 = vmmov 0   ;;  %s222_s0 = inlined_call_operand.vmem [shape: f32[2,32], index: 0, kind: input, shape index: {}]   ;;  %s223_s1 = inlined_call_operand.vmem [shape: f32[32,4], index: 1, kind: input, shape index: {}]   ;;  %s224_s2 = inlined_call_operand.vmem [shape: f32[1,4], index: 2, kind: input, shape index: {}]   ;;  %s225_s3 = inlined_call_operand.hbm [shape: f32[2,4], index: 3, kind: output, shape index: {}]  }
   0x1   :  { %v19_v0 = vld [vmem:[%s223_s1 + $0x18] sm:$0xff]  ;;  %135 = vmatprep.subr.mxu0 %v175_v1  ;;  %v18_v2 = vld [vmem:[%s223_s1 + $0x10] sm:$0xff]  ;;  %143 = vmatprep.mubr.msk.f32.mxu0 %vm176_vm0, %v175_v1 }
   0x2   :  { %136 = vmatpush3.msra.mxu0 %v19_v0 }
   0x3   :  { %8 = vsyncpa [#allocation3], 0  ;;  %137 = vmatprep.subr.mxu0 %v175_v1  ;;  %v17_v3 = vld [vmem:[%s223_s1 + $0x8] sm:$0xff]  ;;  %v16_v4 = vld [vmem:[%s223_s1] sm:$0xff]  ;;  %vm27_vm1 = vcmask 261120   ;;  %vm101_vm2 = vcmask 25600  }
   0x4   :  { %138 = vmatpush3.msra.mxu0 %v18_v2  ;;  %v15_v5 = vld [vmem:[%s222_s0] sm:$0x3]  ;;  %s177_s0 = smov [#allocation2]  }
   0x5   :  { %139 = vmatprep.subr.mxu0 %v175_v1  ;;  %v128_v6 = vld [vmem:[%s224_s2] ss:$0 sm:$0xff]  ;;  %s120_s1 = sshll.u32 %s177_s0, 4  ;;  %s121_s1 = int_to_ptr.vmem [resolvable:$true] %s120_s1 }
   0x6   :  { %140 = vmatpush3.msra.mxu0 %v17_v3  ;;  %s153_s2 = scalar_lea.vmem %s121_s1, 32  ;;  %p158_p1 = scmp.lt.s32.totalorder %s121_s1, %s121_s1 }
   0x7   :  { %141 = vmatprep.subr.mxu0 %v175_v1  ;;  %p154_p0 = scmp.ne.s32.totalorder %s121_s1, %s153_s2  ;;  %p159_p2 = scmp.lt.s32.totalorder %s153_s2, %s153_s2 }
   0x8   :  { %142 = vmatpush3.msra.mxu0 %v16_v4 }
   0x9   :  { %144 = vmatmul.mubr.msk.f32.vlgmr.msra.gmra.mxu0 %vm27_vm1, %v15_v5  ;;  %p160_p3 = por %p159_p2, %p158_p1 }
   0xb   :  { %p161_p4 = pnand %p160_p3, %p154_p0 }
  0xc9   :  { %v97_v7 = vpop.f32.mrf.mxu0 }
  0xca   :  { %v98_v8 = vadd.f32 %v128_v6, %v97_v7 }
  0xcb   :  { %v145_v9 = vpop.f32.mrf.mxu0 }
  0xcc   :  { %v102_v10 = vsel %vm101_vm2, %v98_v8, -inf }
  0xcd   :  { %103 = vmax.xlane.f32.xlu0 %v102_v10 }
 0x156   :  { %v104_v11 = vpop.xlane.xlu0 %103 }
 0x157   :  { %v105_v12 = vsub.f32 %v98_v8, %v104_v11 }
 0x159   :  { %v106_v13 = vmul.f32 1.442695, %v105_v12 }
 0x15b   :  { %149 = vpow2.f32 %v106_v13 }
 0x168   :  { %v150_v14 = vpop.eup %149 }
 0x169   :  { %v108_v15 = vsel %vm101_vm2, %v150_v14, 0.0 }
 0x16a   :  { %109 = vadd.xlane.f32.xlu0 %v108_v15 }
 0x1f3   :  { %v110_v16 = vpop.xlane.xlu0 %109 }
 0x1f4   :  { %151 = vrcp.f32 %v110_v16 }
 0x201   :  { %v152_v17 = vpop.eup %151 }
 0x202   :  { %v112_v18 = vmul.f32 %v152_v17, %v150_v14 }
 0x204   :  { %113 = vst.msk [vmem:[#allocation2] sm:$0x3] %vm101_vm2, %v112_v18 }
 0x205   :  { %164 = shalt.err (!%p161_p4)
}
 0x206   :  { %123 = dma.vmem_to_hbm [thread:$0]  %s121_s1, 32, %s225_s3, [#allocation3]  }
 0x207   :  { %173 = dma.done.wait [#allocation3], 32  }
 0x208   :  { %174 = vsyncadd [#allocation3], 4294967264 }
 0x209   :  { %127 = vsyncpa [#allocation3], 1 }

</bundles_post_ra>
